<compile_context>
chip_gen: v6e
topology: v6e:2x2x1
jax: 0.10.0
libtpu: 0.0.40
codegen_flags: <defaults>
</compile_context>

<pallas_src>
import functools

import jax
import jax.numpy as jnp
from jax.experimental import pallas as pl
from jax.experimental.pallas import tpu as pltpu

EPS = 1e-5    # PyTorch BatchNorm1d default eps
LANE = 128    # TPU lane width


def _round_up(n, m):
    return ((n + m - 1) // m) * m


def _pad2d(a, rows, cols):
    out = jnp.zeros((rows, cols), jnp.float32)
    return out.at[: a.shape[0], : a.shape[1]].set(a.astype(jnp.float32))


# ----------------------------------------------------------------------------
# Kernel: one grid step == one Block. Weights streamed, activation resident.
# ----------------------------------------------------------------------------
def _mlp_block_kernel(x_ref, w1_ref, w2_ref, wres_ref, vec_ref, o_ref):
    # Block 0: seed the resident activation buffer with the (padded) input.
    @pl.when(pl.program_id(0) == 0)
    def _():
        o_ref[...] = x_ref[...].astype(o_ref.dtype)

    x = o_ref[...].astype(jnp.float32)        # (B, F) running activation, f32
    mm_dtype = w1_ref.dtype                   # bf16 (default) or f32
    x_mm = x.astype(mm_dtype)

    # Per-block vector table rows (all width F, zero-padded).
    g1 = vec_ref[0:1, :]
    be1 = vec_ref[1:2, :]
    b2 = vec_ref[2:3, :]
    g2 = vec_ref[3:4, :]
    be2 = vec_ref[4:5, :]
    bres = vec_ref[5:6, :]
    sbeta = vec_ref[6:7, :]                   # Swish beta, broadcast across F
    bn2_on = vec_ref[7:8, :]                  # 1.0 if batchnorm2 present, else 0.0

    # linear1 (bias dropped: exactly cancelled by batch-stat BN1) -> BN1 -> Swish
    t = jnp.dot(x_mm, w1_ref[...], preferred_element_type=jnp.float32)
    mu = jnp.mean(t, axis=0, keepdims=True)
    var = jnp.maximum(jnp.mean(t * t, axis=0, keepdims=True) - mu * mu, 0.0)
    t = (t - mu) * jax.lax.rsqrt(var + EPS) * g1 + be1
    t = t * jax.nn.sigmoid(sbeta * t)

    # linear2 -> Swish
    out = jnp.dot(t.astype(mm_dtype), w2_ref[...],
                  preferred_element_type=jnp.float32) + b2
    out = out * jax.nn.sigmoid(sbeta * out)

    # optional batchnorm2 (present iff hidden_features != out_features),
    # branchless per-block blend (cheap; only real for the last block normally).
    mu2 = jnp.mean(out, axis=0, keepdims=True)
    var2 = jnp.maximum(jnp.mean(out * out, axis=0, keepdims=True) - mu2 * mu2, 0.0)
    out_bn2 = (out - mu2) * jax.lax.rsqrt(var2 + EPS) * g2 + be2
    out = bn2_on * out_bn2 + (1.0 - bn2_on) * out

    # residual (+ identity if dims match) + process_last, folded into one
    # (F, F) matmul + bias on the host side.
    res = jnp.dot(x_mm, wres_ref[...], preferred_element_type=jnp.float32)
    o_ref[...] = (out + res + bres).astype(o_ref.dtype)


# ----------------------------------------------------------------------------
# One-time host-side folding / padding / stacking of per-block weights.
# ----------------------------------------------------------------------------
def prepare_mlp(block_params, matmul_dtype=jnp.bfloat16):
    feat = LANE
    for p in block_params:
        feat = max(feat, p["w1"].shape[0], p["w1"].shape[1], p["w2"].shape[1])
    F = _round_up(feat, LANE)

    w1s, w2s, wress, vecs = [], [], [], []
    for p in block_params:
        fin, hidden = p["w1"].shape
        fout = p["w2"].shape[1]
        assert fin >= 2, "process_last fold requires in_features >= 2"

        # Fold process_last into the residual path: residual + last = x @ Wres + bres
        if p["wm"] is not None:
            wres = p["wm"].at[fin - 2: fin, :].add(p["wp"])
            bres = p["bm"] + p["bp"]
        else:  # identity residual
            wres = jnp.eye(fin, fout, dtype=jnp.float32).at[fin - 2: fin, :].add(p["wp"])
            bres = p["bp"]

        w1s.append(_pad2d(p["w1"], F, F))
        w2s.append(_pad2d(p["w2"], F, F))
        wress.append(_pad2d(wres, F, F))

        vec = jnp.zeros((8, F), jnp.float32)
        vec = vec.at[0, :hidden].set(p["g1"].reshape(-1))
        vec = vec.at[1, :hidden].set(p["be1"].reshape(-1))
        vec = vec.at[2, :fout].set(p["b2"].reshape(-1))
        if p["g2"] is not None:
            vec = vec.at[3, :fout].set(p["g2"].reshape(-1))
            vec = vec.at[4, :fout].set(p["be2"].reshape(-1))
            vec = vec.at[7, :].set(1.0)
        vec = vec.at[5, :fout].set(bres.reshape(-1))
        vec = vec.at[6, :].set(p["sbeta"].reshape(()))
        vecs.append(vec)

    prep = {
        "W1s": jnp.stack(w1s).astype(matmul_dtype),     # (NB, F, F)
        "W2s": jnp.stack(w2s).astype(matmul_dtype),     # (NB, F, F)
        "Wress": jnp.stack(wress).astype(matmul_dtype), # (NB, F, F)
        "vecs": jnp.stack(vecs),                        # (NB, 8, F) f32
    }
    out_dim = block_params[-1]["w2"].shape[1]
    return prep, out_dim


# ----------------------------------------------------------------------------
# Forward wrapper (jit this): pad x, launch a single pallas_call over blocks.
# ----------------------------------------------------------------------------
def mlp_forward(x, prep, *, out_dim):
    W1s, W2s, Wress, vecs = prep["W1s"], prep["W2s"], prep["Wress"], prep["vecs"]
    num_blocks, F, _ = W1s.shape
    B, in_dim = x.shape

    x_p = jnp.zeros((B, F), jnp.float32).at[:, :in_dim].set(x.astype(jnp.float32))

    wbytes = W1s.dtype.itemsize
    flops = num_blocks * 2 * B * 3 * F * F
    transcendentals = num_blocks * 2 * B * F
    bytes_accessed = (3 * num_blocks * F * F * wbytes
                      + num_blocks * 8 * F * 4 + 2 * B * F * 4)

    # VMEM budget: double-buffered per-block weights + vector table, plus
    # the input block and the resident activation/output block.
    est = 2 * (3 * F * F * wbytes + 8 * F * 4) + 4 * B * F * 4
    vmem_limit = int(min(max(2 * est, 32 << 20), 100 << 20))

    out_padded = pl.pallas_call(
        _mlp_block_kernel,
        out_shape=jax.ShapeDtypeStruct((B, F), jnp.float32),
        grid=(num_blocks,),
        in_specs=[
            pl.BlockSpec((B, F), lambda b: (0, 0)),            # x (fetched once)
            pl.BlockSpec((None, F, F), lambda b: (b, 0, 0)),   # W1  (streamed)
            pl.BlockSpec((None, F, F), lambda b: (b, 0, 0)),   # W2  (streamed)
            pl.BlockSpec((None, F, F), lambda b: (b, 0, 0)),   # Wres (streamed)
            pl.BlockSpec((None, 8, F), lambda b: (b, 0, 0)),   # BN/bias/beta table
        ],
        out_specs=pl.BlockSpec((B, F), lambda b: (0, 0)),       # resident activation
        compiler_params=pltpu.CompilerParams(
            dimension_semantics=("arbitrary",),                 # sequential carry
            vmem_limit_bytes=vmem_limit,
        ),
        cost_estimate=pl.CostEstimate(
            flops=flops, transcendentals=transcendentals,
            bytes_accessed=bytes_accessed),
    )(x_p, W1s, W2s, Wress, vecs)

    return out_padded[:, :out_dim]


# ----------------------------------------------------------------------------
# Deterministic parameter init (shapes follow Block.__init__)
# ----------------------------------------------------------------------------
def init_block(key, fin, hidden, fout):
    ks = jax.random.split(key, 8)
    s = 0.1
    p = {
        "w1": s * jax.random.normal(ks[0], (fin, hidden), jnp.float32),
        "b1": s * jax.random.normal(ks[1], (1, hidden), jnp.float32),
        "g1": jnp.ones((1, hidden), jnp.float32),
        "be1": jnp.zeros((1, hidden), jnp.float32),
        "w2": s * jax.random.normal(ks[2], (hidden, fout), jnp.float32),
        "b2": s * jax.random.normal(ks[3], (1, fout), jnp.float32),
        "wp": s * jax.random.normal(ks[4], (2, fout), jnp.float32),
        "bp": s * jax.random.normal(ks[5], (1, fout), jnp.float32),
        "sbeta": jnp.ones((1, 1), jnp.float32),  # Swish beta init = 1.0
    }
    if hidden != fout:
        p["g2"] = jnp.ones((1, fout), jnp.float32)
        p["be2"] = jnp.zeros((1, fout), jnp.float32)
    else:
        p["g2"] = None
        p["be2"] = None
    if fin != fout:
        p["wm"] = s * jax.random.normal(ks[6], (fin, fout), jnp.float32)
        p["bm"] = s * jax.random.normal(ks[7], (1, fout), jnp.float32)
    else:
        p["wm"] = None
        p["bm"] = None
    return p


def init_mlp(key, num_blocks, input_dim, hidden_dim, output_dim):
    keys = jax.random.split(key, num_blocks)
    blocks = []
    for i in range(num_blocks):
        fin = input_dim if i == 0 else hidden_dim
        fout = hidden_dim if i != num_blocks - 1 else output_dim
        blocks.append(init_block(keys[i], fin, hidden_dim, fout))
    return blocks


# ----------------------------------------------------------------------------
# Pure-JAX reference (mirrors the PyTorch forward exactly) for verification
# ----------------------------------------------------------------------------
def block_ref(x, p):
    sb = p["sbeta"][0, 0]
    swish = lambda v: v * jax.nn.sigmoid(sb * v)
    h = x @ p["w1"] + p["b1"]
    mu = jnp.mean(h, axis=0, keepdims=True)
    var = jnp.mean((h - mu) ** 2, axis=0, keepdims=True)
    h = swish((h - mu) * jax.lax.rsqrt(var + EPS) * p["g1"] + p["be1"])
    out = swish(h @ p["w2"] + p["b2"])
    if p["g2"] is not None:
        mu2 = jnp.mean(out, axis=0, keepdims=True)
        var2 = jnp.mean((out - mu2) ** 2, axis=0, keepdims=True)
        out = (out - mu2) * jax.lax.rsqrt(var2 + EPS) * p["g2"] + p["be2"]
    residual = x @ p["wm"] + p["bm"] if p["wm"] is not None else x
    last = x[:, -2:] @ p["wp"] + p["bp"]
    return out + residual + last


def mlp_ref(x, block_params):
    for p in block_params:
        x = block_ref(x, p)
    return x


if __name__ == "__main__":
    num_blocks, input_dim, hidden_dim, output_dim = 3, 16, 32, 16
    batch = 8

    key = jax.random.PRNGKey(0)
    kx, kp = jax.random.split(key)
    x = jax.random.normal(kx, (batch, input_dim), jnp.float32)
    params = init_mlp(kp, num_blocks, input_dim, hidden_dim, output_dim)

    ref = jax.block_until_ready(mlp_ref(x, params))

    # f32 matmul path: tight check against the PyTorch-equivalent reference.
    prep32, out_dim = prepare_mlp(params, matmul_dtype=jnp.float32)
    fwd32 = jax.jit(functools.partial(mlp_forward, out_dim=out_dim))
    out32 = jax.block_until_ready(fwd32(x, prep32))
    assert out32.shape == (batch, output_dim), out32.shape
    err32 = float(jnp.max(jnp.abs(out32 - ref)))
    assert jnp.allclose(out32, ref, atol=1e-4, rtol=1e-4), err32

    # bf16 matmul path (production default: native MXU dtype, half the weight DMA).
    prep16, _ = prepare_mlp(params, matmul_dtype=jnp.bfloat16)
    fwd16 = jax.jit(functools.partial(mlp_forward, out_dim=out_dim))
    out16 = jax.block_until_ready(fwd16(x, prep16))
    assert out16.shape == (batch, output_dim), out16.shape
    err16 = float(jnp.max(jnp.abs(out16 - ref)))
    assert jnp.allclose(out16, ref, atol=5e-2, rtol=5e-2), err16

    print("KERNEL_OK")
</pallas_src>

<mosaic_0001>
module attributes {stable_mosaic.version = 11 : i64} {
  func.func @_mlp_block_kernel(%arg0: i32, %arg1: memref<8x128xf32, #tpu.memory_space<vmem>>, %arg2: memref<1x128x128xf32, #tpu.memory_space<vmem>>, %arg3: memref<1x128x128xf32, #tpu.memory_space<vmem>>, %arg4: memref<1x128x128xf32, #tpu.memory_space<vmem>>, %arg5: memref<1x8x128xf32, #tpu.memory_space<vmem>>, %arg6: memref<8x128xf32, #tpu.memory_space<vmem>>) attributes {dimension_semantics = [#tpu.dimension_semantics<arbitrary>], iteration_bounds = array<i64: 3>, scalar_prefetch = 0 : i64, scratch_operands = 0 : i64, tpu.core_type = #tpu.core_type<tc>, window_params = [{pipeline_mode = #tpu.pipeline_mode<synchronous>, transform_indices = @transform_0, window_bounds = array<i64: 8, 128>}, {transform_indices = @transform_1, window_bounds = array<i64: 1, 128, 128>}, {transform_indices = @transform_2, window_bounds = array<i64: 1, 128, 128>}, {transform_indices = @transform_3, window_bounds = array<i64: 1, 128, 128>}, {transform_indices = @transform_4, window_bounds = array<i64: 1, 8, 128>}, {pipeline_mode = #tpu.pipeline_mode<synchronous>, transform_indices = @transform_5, window_bounds = array<i64: 8, 128>}]} {
    %c0_i32 = arith.constant 0 : i32
    %0 = arith.cmpi eq, %arg0, %c0_i32 : i32
    %1 = arith.extui %0 : i1 to i32
    %c0_i32_0 = arith.constant 0 : i32
    %2 = arith.cmpi ne, %1, %c0_i32_0 : i32
    scf.if %2 {
      %c0_47 = arith.constant 0 : index
      %c0_48 = arith.constant 0 : index
      %106 = vector.load %arg1[%c0_47, %c0_48] : memref<8x128xf32, #tpu.memory_space<vmem>>, vector<8x128xf32>
      %c0_49 = arith.constant 0 : index
      %c0_50 = arith.constant 0 : index
      %107 = vector.load %arg6[%c0_49, %c0_50] : memref<8x128xf32, #tpu.memory_space<vmem>>, vector<8x128xf32>
      tpu.vector_store %arg6[%c0_49, %c0_50], %106 {strides = array<i32>} : memref<8x128xf32, #tpu.memory_space<vmem>>, vector<8x128xf32>,
    } else {
    }
    %c0 = arith.constant 0 : index
    %c0_1 = arith.constant 0 : index
    %3 = vector.load %arg6[%c0, %c0_1] : memref<8x128xf32, #tpu.memory_space<vmem>>, vector<8x128xf32>
    %c0_2 = arith.constant 0 : index
    %c0_3 = arith.constant 0 : index
    %c0_4 = arith.constant 0 : index
    %4 = vector.load %arg5[%c0_2, %c0_3, %c0_4] : memref<1x8x128xf32, #tpu.memory_space<vmem>>, vector<1x1x128xf32>
    %5 = vector.shape_cast %4 : vector<1x1x128xf32> to vector<1x128xf32>
    %c0_5 = arith.constant 0 : index
    %c1 = arith.constant 1 : index
    %c0_6 = arith.constant 0 : index
    %6 = vector.load %arg5[%c0_5, %c1, %c0_6] : memref<1x8x128xf32, #tpu.memory_space<vmem>>, vector<1x1x128xf32>
    %7 = vector.shape_cast %6 : vector<1x1x128xf32> to vector<1x128xf32>
    %c0_7 = arith.constant 0 : index
    %c2 = arith.constant 2 : index
    %c0_8 = arith.constant 0 : index
    %8 = vector.load %arg5[%c0_7, %c2, %c0_8] : memref<1x8x128xf32, #tpu.memory_space<vmem>>, vector<1x1x128xf32>
    %9 = vector.shape_cast %8 : vector<1x1x128xf32> to vector<1x128xf32>
    %c0_9 = arith.constant 0 : index
    %c3 = arith.constant 3 : index
    %c0_10 = arith.constant 0 : index
    %10 = vector.load %arg5[%c0_9, %c3, %c0_10] : memref<1x8x128xf32, #tpu.memory_space<vmem>>, vector<1x1x128xf32>
    %11 = vector.shape_cast %10 : vector<1x1x128xf32> to vector<1x128xf32>
    %c0_11 = arith.constant 0 : index
    %c4 = arith.constant 4 : index
    %c0_12 = arith.constant 0 : index
    %12 = vector.load %arg5[%c0_11, %c4, %c0_12] : memref<1x8x128xf32, #tpu.memory_space<vmem>>, vector<1x1x128xf32>
    %13 = vector.shape_cast %12 : vector<1x1x128xf32> to vector<1x128xf32>
    %c0_13 = arith.constant 0 : index
    %c5 = arith.constant 5 : index
    %c0_14 = arith.constant 0 : index
    %14 = vector.load %arg5[%c0_13, %c5, %c0_14] : memref<1x8x128xf32, #tpu.memory_space<vmem>>, vector<1x1x128xf32>
    %15 = vector.shape_cast %14 : vector<1x1x128xf32> to vector<1x128xf32>
    %c0_15 = arith.constant 0 : index
    %c6 = arith.constant 6 : index
    %c0_16 = arith.constant 0 : index
    %16 = vector.load %arg5[%c0_15, %c6, %c0_16] : memref<1x8x128xf32, #tpu.memory_space<vmem>>, vector<1x1x128xf32>
    %17 = vector.shape_cast %16 : vector<1x1x128xf32> to vector<1x128xf32>
    %c0_17 = arith.constant 0 : index
    %c7 = arith.constant 7 : index
    %c0_18 = arith.constant 0 : index
    %18 = vector.load %arg5[%c0_17, %c7, %c0_18] : memref<1x8x128xf32, #tpu.memory_space<vmem>>, vector<1x1x128xf32>
    %19 = vector.shape_cast %18 : vector<1x1x128xf32> to vector<1x128xf32>
    %c0_19 = arith.constant 0 : index
    %c0_20 = arith.constant 0 : index
    %c0_21 = arith.constant 0 : index
    %20 = vector.load %arg2[%c0_19, %c0_20, %c0_21] : memref<1x128x128xf32, #tpu.memory_space<vmem>>, vector<1x128x128xf32>
    %21 = vector.shape_cast %20 : vector<1x128x128xf32> to vector<128x128xf32>
    %cst = arith.constant dense<0.000000e+00> : vector<8x128xf32>
    %22 = tpu.matmul %3, %21, %cst {dimension_numbers = #tpu.dot_dimension_numbers<[1], [0], [0], [1], [0, 0, 1, 1], [], []>} : vector<8x128xf32>, vector<128x128xf32>, vector<8x128xf32> -> vector<8x128xf32>
    %cst_22 = arith.constant dense<0.000000e+00> : vector<128xf32>
    %23 = vector.multi_reduction <add>, %22, %cst_22 [0] : vector<8x128xf32> to vector<128xf32>
    %24 = vector.shape_cast %23 : vector<128xf32> to vector<1x128xf32>
    %cst_23 = arith.constant 8.000000e+00 : f32
    %25 = vector.broadcast %cst_23 : f32 to vector<1x128xf32>
    %26 = arith.divf %24, %25 : vector<1x128xf32>
    %27 = arith.mulf %22, %22 : vector<8x128xf32>
    %cst_24 = arith.constant dense<0.000000e+00> : vector<128xf32>
    %28 = vector.multi_reduction <add>, %27, %cst_24 [0] : vector<8x128xf32> to vector<128xf32>
    %29 = vector.shape_cast %28 : vector<128xf32> to vector<1x128xf32>
    %cst_25 = arith.constant 8.000000e+00 : f32
    %30 = vector.broadcast %cst_25 : f32 to vector<1x128xf32>
    %31 = arith.divf %29, %30 : vector<1x128xf32>
    %32 = arith.mulf %26, %26 : vector<1x128xf32>
    %33 = arith.subf %31, %32 : vector<1x128xf32>
    %cst_26 = arith.constant 0.000000e+00 : f32
    %34 = vector.broadcast %cst_26 : f32 to vector<1x128xf32>
    %35 = arith.maximumf %33, %34 : vector<1x128xf32>
    %36 = vector.broadcast %26 : vector<1x128xf32> to vector<8x128xf32>
    %37 = arith.subf %22, %36 : vector<8x128xf32>
    %cst_27 = arith.constant 9.99999974E-6 : f32
    %38 = vector.broadcast %cst_27 : f32 to vector<1x128xf32>
    %39 = arith.addf %35, %38 : vector<1x128xf32>
    %40 = math.rsqrt %39 : vector<1x128xf32>
    %41 = vector.broadcast %40 : vector<1x128xf32> to vector<8x128xf32>
    %42 = arith.mulf %37, %41 : vector<8x128xf32>
    %43 = vector.broadcast %5 : vector<1x128xf32> to vector<8x128xf32>
    %44 = arith.mulf %42, %43 : vector<8x128xf32>
    %45 = vector.broadcast %7 : vector<1x128xf32> to vector<8x128xf32>
    %46 = arith.addf %44, %45 : vector<8x128xf32>
    %47 = vector.broadcast %17 : vector<1x128xf32> to vector<8x128xf32>
    %48 = arith.mulf %47, %46 : vector<8x128xf32>
    %49 = arith.negf %48 : vector<8x128xf32>
    %50 = math.exp %49 : vector<8x128xf32>
    %cst_28 = arith.constant 1.000000e+00 : f32
    %51 = vector.broadcast %cst_28 : f32 to vector<8x128xf32>
    %52 = arith.addf %51, %50 : vector<8x128xf32>
    %53 = arith.divf %51, %52 : vector<8x128xf32>
    %54 = arith.mulf %46, %53 : vector<8x128xf32>
    %c0_29 = arith.constant 0 : index
    %c0_30 = arith.constant 0 : index
    %c0_31 = arith.constant 0 : index
    %55 = vector.load %arg3[%c0_29, %c0_30, %c0_31] : memref<1x128x128xf32, #tpu.memory_space<vmem>>, vector<1x128x128xf32>
    %56 = vector.shape_cast %55 : vector<1x128x128xf32> to vector<128x128xf32>
    %cst_32 = arith.constant dense<0.000000e+00> : vector<8x128xf32>
    %57 = tpu.matmul %54, %56, %cst_32 {dimension_numbers = #tpu.dot_dimension_numbers<[1], [0], [0], [1], [0, 0, 1, 1], [], []>} : vector<8x128xf32>, vector<128x128xf32>, vector<8x128xf32> -> vector<8x128xf32>
    %58 = vector.broadcast %9 : vector<1x128xf32> to vector<8x128xf32>
    %59 = arith.addf %57, %58 : vector<8x128xf32>
    %60 = vector.broadcast %17 : vector<1x128xf32> to vector<8x128xf32>
    %61 = arith.mulf %60, %59 : vector<8x128xf32>
    %62 = arith.negf %61 : vector<8x128xf32>
    %63 = math.exp %62 : vector<8x128xf32>
    %cst_33 = arith.constant 1.000000e+00 : f32
    %64 = vector.broadcast %cst_33 : f32 to vector<8x128xf32>
    %65 = arith.addf %64, %63 : vector<8x128xf32>
    %66 = arith.divf %64, %65 : vector<8x128xf32>
    %67 = arith.mulf %59, %66 : vector<8x128xf32>
    %cst_34 = arith.constant dense<0.000000e+00> : vector<128xf32>
    %68 = vector.multi_reduction <add>, %67, %cst_34 [0] : vector<8x128xf32> to vector<128xf32>
    %69 = vector.shape_cast %68 : vector<128xf32> to vector<1x128xf32>
    %cst_35 = arith.constant 8.000000e+00 : f32
    %70 = vector.broadcast %cst_35 : f32 to vector<1x128xf32>
    %71 = arith.divf %69, %70 : vector<1x128xf32>
    %72 = arith.mulf %67, %67 : vector<8x128xf32>
    %cst_36 = arith.constant dense<0.000000e+00> : vector<128xf32>
    %73 = vector.multi_reduction <add>, %72, %cst_36 [0] : vector<8x128xf32> to vector<128xf32>
    %74 = vector.shape_cast %73 : vector<128xf32> to vector<1x128xf32>
    %cst_37 = arith.constant 8.000000e+00 : f32
    %75 = vector.broadcast %cst_37 : f32 to vector<1x128xf32>
    %76 = arith.divf %74, %75 : vector<1x128xf32>
    %77 = arith.mulf %71, %71 : vector<1x128xf32>
    %78 = arith.subf %76, %77 : vector<1x128xf32>
    %cst_38 = arith.constant 0.000000e+00 : f32
    %79 = vector.broadcast %cst_38 : f32 to vector<1x128xf32>
    %80 = arith.maximumf %78, %79 : vector<1x128xf32>
    %81 = vector.broadcast %71 : vector<1x128xf32> to vector<8x128xf32>
    %82 = arith.subf %67, %81 : vector<8x128xf32>
    %cst_39 = arith.constant 9.99999974E-6 : f32
    %83 = vector.broadcast %cst_39 : f32 to vector<1x128xf32>
    %84 = arith.addf %80, %83 : vector<1x128xf32>
    %85 = math.rsqrt %84 : vector<1x128xf32>
    %86 = vector.broadcast %85 : vector<1x128xf32> to vector<8x128xf32>
    %87 = arith.mulf %82, %86 : vector<8x128xf32>
    %88 = vector.broadcast %11 : vector<1x128xf32> to vector<8x128xf32>
    %89 = arith.mulf %87, %88 : vector<8x128xf32>
    %90 = vector.broadcast %13 : vector<1x128xf32> to vector<8x128xf32>
    %91 = arith.addf %89, %90 : vector<8x128xf32>
    %92 = vector.broadcast %19 : vector<1x128xf32> to vector<8x128xf32>
    %93 = arith.mulf %92, %91 : vector<8x128xf32>
    %cst_40 = arith.constant 1.000000e+00 : f32
    %94 = vector.broadcast %cst_40 : f32 to vector<1x128xf32>
    %95 = arith.subf %94, %19 : vector<1x128xf32>
    %96 = vector.broadcast %95 : vector<1x128xf32> to vector<8x128xf32>
    %97 = arith.mulf %96, %67 : vector<8x128xf32>
    %98 = arith.addf %93, %97 : vector<8x128xf32>
    %c0_41 = arith.constant 0 : index
    %c0_42 = arith.constant 0 : index
    %c0_43 = arith.constant 0 : index
    %99 = vector.load %arg4[%c0_41, %c0_42, %c0_43] : memref<1x128x128xf32, #tpu.memory_space<vmem>>, vector<1x128x128xf32>
    %100 = vector.shape_cast %99 : vector<1x128x128xf32> to vector<128x128xf32>
    %cst_44 = arith.constant dense<0.000000e+00> : vector<8x128xf32>
    %101 = tpu.matmul %3, %100, %cst_44 {dimension_numbers = #tpu.dot_dimension_numbers<[1], [0], [0], [1], [0, 0, 1, 1], [], []>} : vector<8x128xf32>, vector<128x128xf32>, vector<8x128xf32> -> vector<8x128xf32>
    %102 = arith.addf %98, %101 : vector<8x128xf32>
    %103 = vector.broadcast %15 : vector<1x128xf32> to vector<8x128xf32>
    %104 = arith.addf %102, %103 : vector<8x128xf32>
    %c0_45 = arith.constant 0 : index
    %c0_46 = arith.constant 0 : index
    %105 = vector.load %arg6[%c0_45, %c0_46] : memref<8x128xf32, #tpu.memory_space<vmem>>, vector<8x128xf32>
    tpu.vector_store %arg6[%c0_45, %c0_46], %104 {strides = array<i32>} : memref<8x128xf32, #tpu.memory_space<vmem>>, vector<8x128xf32>,
    return
  }
  func.func @transform_0(%arg0: i32) -> (i32, i32) {
    %c0_i32 = arith.constant 0 : i32
    %c0_i32_0 = arith.constant 0 : i32
    %c0_i32_1 = arith.constant 0 : i32
    return %c0_i32, %c0_i32_0 : i32, i32
  }
  func.func @transform_1(%arg0: i32) -> (i32, i32, i32) {
    %c0_i32 = arith.constant 0 : i32
    %c0_i32_0 = arith.constant 0 : i32
    %c0_i32_1 = arith.constant 0 : i32
    return %arg0, %c0_i32, %c0_i32_0 : i32, i32, i32
  }
  func.func @transform_2(%arg0: i32) -> (i32, i32, i32) {
    %c0_i32 = arith.constant 0 : i32
    %c0_i32_0 = arith.constant 0 : i32
    %c0_i32_1 = arith.constant 0 : i32
    return %arg0, %c0_i32, %c0_i32_0 : i32, i32, i32
  }
  func.func @transform_3(%arg0: i32) -> (i32, i32, i32) {
    %c0_i32 = arith.constant 0 : i32
    %c0_i32_0 = arith.constant 0 : i32
    %c0_i32_1 = arith.constant 0 : i32
    return %arg0, %c0_i32, %c0_i32_0 : i32, i32, i32
  }
  func.func @transform_4(%arg0: i32) -> (i32, i32, i32) {
    %c0_i32 = arith.constant 0 : i32
    %c0_i32_0 = arith.constant 0 : i32
    %c0_i32_1 = arith.constant 0 : i32
    return %arg0, %c0_i32, %c0_i32_0 : i32, i32, i32
  }
  func.func @transform_5(%arg0: i32) -> (i32, i32) {
    %c0_i32 = arith.constant 0 : i32
    %c0_i32_0 = arith.constant 0 : i32
    %c0_i32_1 = arith.constant 0 : i32
    return %c0_i32, %c0_i32_0 : i32, i32
  }
}

</mosaic_0001>

<bundles_post_ra>
// kernel: mlp_forward.1
= control target key start
LH: loop header
LB: loop body
LE: loop exit
PB: predicated region body
PF: predicated region fallthrough
CT: control target
= control target key end

     0   :  { %10 = vsyncpa [#allocation3], 0  ;;  %s1603_s0 = inlined_call_operand.vmem [shape: f32[8,128], index: 0, kind: input, shape index: {}]   ;;  %s1604_s1 = inlined_call_operand.hbm [shape: f32[3,128,128], index: 1, kind: input, shape index: {}]   ;;  %s1605_s2 = inlined_call_operand.hbm [shape: f32[3,128,128], index: 2, kind: input, shape index: {}]   ;;  %s1606_s3 = inlined_call_operand.hbm [shape: f32[3,128,128], index: 3, kind: input, shape index: {}]   ;;  %s1607_s4 = inlined_call_operand.vmem [shape: f32[3,8,128], index: 4, kind: input, shape index: {}]   ;;  %s1608_s5 = inlined_call_operand.hbm [shape: f32[8,128], index: 5, kind: output, shape index: {}]  }
   0x1   :  { %12 = vsyncpa [#allocation3 + $0x1], 0 }
   0x2   :  { %13 = vsyncpa [#allocation6], 0 }
   0x3   :  { %15 = vsyncpa [#allocation6 + $0x1], 0 }
   0x4   :  { %16 = vsyncpa [#allocation4], 0  ;;  %s1270_s18 = smov 0   ;;  %s1272_s19 = smov 0  }
   0x5   :  { %s1274_s20 = smov 0   ;;  %s1276_s21 = smov 0  }
   0x6 LB: > { %s1289_s22 = sadd.s32 4294967295, %s1230_s21   ;;  %s1292_s23 = sadd.s32 1, %s1230_s21   ;;  %s1230_s21 = sphi %s1276_s21, %s1627_s21   ;;  %s1226_s20 = sphi %s1274_s20, %s1626_s20   ;;  %s1222_s19 = sphi %s1272_s19, %s1625_s19   ;;  %s1218_s18 = sphi %s1270_s18, %s1624_s18  }
   0x7   : > { %s47_s24 = ssub.s32 %s1230_s21, %s1292_s23  ;;  %s50_s25 = sadd.s32 1, %s1226_s20 }
   0x8   : > { %p48_p0 = scmp.eq.s32.totalorder %s47_s24, 0  ;;  %p57_p1 = scmp.ne.s32.totalorder %s1226_s20, %s1222_s19 }
   0x9   : > { %p58_p2 = scmp.eq.s32.totalorder %s1230_s21, 0  ;;  %p63_p3 = scmp.ne.s32.totalorder %s1222_s19, %s1218_s18 }
   0xa   : > { %s1302_s26 = scalar_select %p48_p0, %s1226_s20, %s50_s25  }
   0xb   : > { %p59_p4 = por %p58_p2, %p57_p1  ;;  %p64_p5 = scmp.eq.s32.totalorder %s1289_s22, 0 }
   0xc   : > { %p1028_p6 = scmp.lt.s32.totalorder %s1230_s21, 3  ;;  %s189_s28 = sand.u32 1, %s1226_s20  }
   0xd   : > { %p1306_p7 = por %p64_p5, %p63_p3  ;;  %s1313_s29 = sshll.u32 %s189_s28, 7 }
   0xe   : > { %s1316_s30 = sshll.u32 %s1230_s21, 11  ;;  %p1318_p8 = pnand %p1028_p6, %p59_p4 }
   0xf   : > { %s1614_s27 = scalar_select %p1306_p7, 1, 0 }
  0x10   : > { %s210_s7 = sand.u32 1, %s1230_s21   ;;  %s1327_s10 = scalar_lea.hbm %s1605_s2, %s1316_s30 }
  0x11   : > { %s214_s11 = scalar_lea.vmem [#allocation5], %s1313_s29  ;;  %s1334_s13 = scalar_lea.sflag [#allocation6], %s210_s7 }
  0x12   : > { %s221_s12 = sshll.u32 %s214_s11, 4  ;;  %s1080_s14 = scalar_lea.hbm %s1327_s10, 2048  ;;  %s1331_s12 = int_to_ptr.vmem [resolvable:$true] %s221_s12 }
  0x13   : > { %p1081_p11 = scmp.ne.s32.totalorder %s1327_s10, %s1080_s14  ;;  %p1340_p12 = pneg %p1318_p8 }
  0x14   : > { %s1085_s18 = scalar_lea.hbm %s1605_s2, 6144  ;;  %p1086_p1 = scmp.lt.s32.totalorder %s1327_s10, %s1605_s2 }
  0x15   : > { %p1083_p13 = pnand %p1340_p12, %p1081_p11  ;;  %p1087_p2 = scmp.lt.s32.totalorder %s1085_s18, %s1080_s14 }
  0x17   : > { %p1084_p0 = pneg %p1083_p13  ;;  %p1088_p3 = por %p1087_p2, %p1086_p1 }
  0x19   : > { %p1089_p4 = pnand %p1088_p3, %p1084_p0 }
  0x1b   : > { %1092 = shalt.err (!%p1089_p4)
}
  0x1c   : > { %s1093_s7 = scalar_lea.vmem %s1331_s12, 2048  ;;  %s1232_s8 = smov [#allocation5]  }
  0x1d   : > { %p1094_p5 = scmp.ne.s32.totalorder %s1331_s12, %s1093_s7  ;;  %s1098_s9 = sshll.u32 %s1232_s8, 4  ;;  %s1099_s9 = int_to_ptr.vmem [resolvable:$false] %s1098_s9 }
  0x1e   : > { %s1100_s11 = scalar_lea.vmem %s1099_s9, 4096  ;;  %p1101_p13 = scmp.lt.s32.totalorder %s1331_s12, %s1099_s9 }
  0x1f   : > { %p1096_p6 = pnand %p1094_p5, %p1340_p12  ;;  %p1102_p9 = scmp.lt.s32.totalorder %s1100_s11, %s1093_s7 }
  0x21   : > { %p1097_p11 = pneg %p1096_p6  ;;  %p1103_p10 = por %p1102_p9, %p1101_p13 }
  0x23   : > { %p1104_p7 = pnand %p1103_p10, %p1097_p11 }
  0x25   : > { %1107 = shalt.err (!%p1104_p7)
}
  0x26   : > { %s1610_s14 = smov 128   ;;  %s1612_s16 = smov 8  }
  0x27   : > { %1024 = dma.hbm_to_vmem [thread:$0]  (!%p1318_p8), %s1327_s10, 2048, %s1331_s12, %s1334_s13, %s1610_s14, %s1610_s14, %s1612_s16  }
  0x28   : > { %p1617_p9 = scmp.lt.s32.totalorder %s1230_s21, 4  ;;  %p1618_p7 = scmp.ge.s32.totalorder %s1230_s21, 1 }
  0x29   : > { %s1378_s25 = scalar_lea.hbm %s1604_s1, %s1316_s30  ;;  %s193_s7 = scalar_lea.vmem [#allocation2], %s1313_s29 }
  0x2a   : > { %p1370_p10 = pnand %p1618_p7, %p1617_p9  ;;  %s200_s8 = sshll.u32 %s193_s7, 4  ;;  %s1381_s8 = int_to_ptr.vmem [resolvable:$true] %s200_s8 }
  0x2b   : > { %s1387_s21 = scalar_lea.hbm %s1606_s3, %s1316_s30  ;;  %s190_s12 = scalar_lea.sflag [#allocation3], %s189_s28 }
  0x2c   : > { %s1619_s17 = scalar_select %p1370_p10, 1, 0 }
  0x2d   : > { %s1108_s11 = scalar_lea.hbm %s1378_s25, 2048  ;;  %s1113_s14 = scalar_lea.hbm %s1604_s1, 6144 }
  0x2e   : > { %p1109_p0 = scmp.ne.s32.totalorder %s1378_s25, %s1108_s11  ;;  %p1114_p3 = scmp.lt.s32.totalorder %s1378_s25, %s1604_s1 }
  0x2f   : > { %p1115_p4 = scmp.lt.s32.totalorder %s1113_s14, %s1108_s11 }
  0x30   : > { %p1111_p1 = pnand %p1109_p0, %p1340_p12 }
  0x31   : > { %p1116_p5 = por %p1115_p4, %p1114_p3 }
  0x32   : > { %p1112_p2 = pneg %p1111_p1 }
  0x34   : > { %p1117_p6 = pnand %p1116_p5, %p1112_p2 }
  0x36   : > { %1120 = shalt.err (!%p1117_p6)
}
  0x37   : > { %s1121_s28 = scalar_lea.vmem %s1381_s8, 2048  ;;  %s1235_s30 = smov [#allocation2]  }
  0x38   : > { %p1122_p11 = scmp.ne.s32.totalorder %s1381_s8, %s1121_s28  ;;  %s1126_s9 = sshll.u32 %s1235_s30, 4  ;;  %s1127_s9 = int_to_ptr.vmem [resolvable:$false] %s1126_s9 }
  0x39   : > { %s1128_s10 = scalar_lea.vmem %s1127_s9, 4096  ;;  %p1129_p7 = scmp.lt.s32.totalorder %s1381_s8, %s1127_s9 }
  0x3a   : > { %p1124_p13 = pnand %p1122_p11, %p1340_p12  ;;  %p1130_p0 = scmp.lt.s32.totalorder %s1128_s10, %s1121_s28 }
  0x3c   : > { %p1125_p9 = pneg %p1124_p13  ;;  %p1131_p1 = por %p1130_p0, %p1129_p7 }
  0x3e   : > { %p1132_p10 = pnand %p1131_p1, %p1125_p9 }
  0x40   : > { %1135 = shalt.err (!%p1132_p10)
}
  0x41   : > { %s1620_s14 = smov 8   ;;  %s1621_s16 = smov 128  }
  0x42   : > { %1021 = dma.hbm_to_vmem [thread:$0]  (!%p1318_p8), %s1378_s25, 2048, %s1381_s8, %s190_s12, %s1621_s16, %s1621_s16, %s1620_s14  }
  0x43   : > { %s235_s11 = scalar_lea.vmem [#allocation7], %s1313_s29  ;;  %s1136_s24 = scalar_lea.hbm %s1387_s21, 2048 }
  0x44   : > { %s242_s18 = sshll.u32 %s235_s11, 4  ;;  %p1137_p2 = scmp.ne.s32.totalorder %s1387_s21, %s1136_s24  ;;  %s243_s18 = int_to_ptr.vmem [resolvable:$true] %s242_s18 }
  0x45   : > { %s1141_s30 = scalar_lea.hbm %s1606_s3, 6144  ;;  %p1142_p4 = scmp.lt.s32.totalorder %s1387_s21, %s1606_s3 }
  0x46   : > { %p1139_p10 = pnand %p1137_p2, %p1340_p12  ;;  %p1143_p5 = scmp.lt.s32.totalorder %s1141_s30, %s1136_s24 }
  0x48   : > { %p1140_p3 = pneg %p1139_p10  ;;  %p1144_p6 = por %p1143_p5, %p1142_p4 }
  0x4a   : > { %p1145_p11 = pnand %p1144_p6, %p1140_p3 }
  0x4c   : > { %1148 = shalt.err (!%p1145_p11)
}
  0x4d   : > { %s1149_s29 = scalar_lea.vmem %s243_s18, 2048  ;;  %s1236_s25 = smov [#allocation7]  }
  0x4e   : > { %p1150_p13 = scmp.ne.s32.totalorder %s243_s18, %s1149_s29  ;;  %s1154_s8 = sshll.u32 %s1236_s25, 4  ;;  %s1155_s8 = int_to_ptr.vmem [resolvable:$false] %s1154_s8 }
  0x4f   : > { %s1156_s12 = scalar_lea.vmem %s1155_s8, 4096  ;;  %p1157_p0 = scmp.lt.s32.totalorder %s243_s18, %s1155_s8 }
  0x50   : > { %p1152_p9 = pnand %p1150_p13, %p1340_p12  ;;  %p1158_p1 = scmp.lt.s32.totalorder %s1156_s12, %s1149_s29 }
  0x52   : > { %p1153_p7 = pneg %p1152_p9  ;;  %p1159_p2 = por %p1158_p1, %p1157_p0 }
  0x54   : > { %p1160_p10 = pnand %p1159_p2, %p1153_p7 }
  0x56   : > { %1163 = shalt.err (!%p1160_p10)
}
  0x57   : > { %1027 = dma.hbm_to_vmem [thread:$0]  (!%p1318_p8), %s1387_s21, 2048, %s243_s18, %s1334_s13, %s1621_s16, %s1621_s16, %s1620_s14  }
  0x58   : > { %p1622_p12 = scmp.ne.s32.totalorder %s1619_s17, 0 }
  0x59   : > { %s263_s15 = sand.u32 (!%p1622_p12), 1, %s1222_s19   ;;  %p1623_p3 = scmp.ne.s32.totalorder (!%p1622_p12), %s1614_s27, 0 }
  0x5a   : > { %261 = sbr.rel (%p1622_p12) target bundleno = 699 (0x2bb), region = 40  ;;  %s831_s11 = sshll.u32 (!%p1622_p12), %s263_s15, 7 }
  0x5b   : > { %s264_s24 = scalar_lea.sflag (!%p1622_p12), [#allocation3], %s263_s15  ;;  %s1438_s7 = scalar_lea.vmem (!%p1622_p12), [#allocation2], %s831_s11 }
  0x5f   : > { %1205 = dma.done.wait (%p1623_p3), %s264_s24, 2048  }
  0x60   : > { %1207 = vsyncadd (%p1623_p3), %s264_s24, 4294965248  ;;  %s272_s6 = sand.u32 1, %s1289_s22   ;;  %s1445_s13 = scalar_lea.vmem [#allocation5], %s831_s11 }
  0x61   : > { %s273_s28 = scalar_lea.sflag [#allocation6], %s272_s6 }
  0x62   : > { %1209 = dma.done.wait (%p1623_p3), %s273_s28, 4096  }
  0x63   : > { %1211 = vsyncadd (%p1623_p3), %s273_s28, 4294963200  ;;  %p321_p8 = scmp.lt.s32.totalorder %s1289_s22, 2  ;;  %s1458_s30 = scalar_lea.vmem [#allocation7], %s831_s11 }
  0x64   : > { %p835_p4 = scmp.ne.s32.totalorder %s1289_s22, 0 }
  0x65   : > { %s322_s17 = scalar_select %p321_p8, %s1289_s22, 2 }
  0x66   : > { %328 = sbr.rel (%p835_p4) target bundleno = 109 (0x6d), region = 56 }
  0x67   : > { %s834_s21 = sshll.u32 %s322_s17, 3 }
  0x68   : > { %s1456_s18 = scalar_lea.vmem %s1607_s4, %s834_s21 }
  0x6b   : > { %v329_v0 = vld [vmem:[%s1603_s0] sm:$0xff] }
  0x6c   : > { %330 = vst [vmem:[#allocation8] sm:$0xff] %v329_v0 }
  0x6d PF: > { %v355_v1 = vld [vmem:[%s1438_s7 + $0x78] sm:$0xff]  ;;  %v1237_v2 = vmov 0.0   ;;  %v354_v3 = vld [vmem:[%s1438_s7 + $0x70] sm:$0xff]  ;;  %vm1238_vm0 = vmmov 0   ;;  %v353_v4 = vld [vmem:[%s1438_s7 + $0x68] sm:$0xff]  ;;  %s1239_s27 = smov [#allocation8]  }
  0x6e   : > { %903 = vmatprep.subr.mxu0 %v1237_v2  ;;  %935 = vmatprep.mubr.msk.f32.mxu0 %vm1238_vm0, %v1237_v2  ;;  %v352_v5 = vld [vmem:[%s1438_s7 + $0x60] sm:$0xff]  ;;  %v351_v6 = vld [vmem:[%s1438_s7 + $0x58] sm:$0xff]  ;;  %v350_v7 = vld [vmem:[%s1438_s7 + $0x50] sm:$0xff]  ;;  %s713_s29 = sshll.u32 %s1239_s27, 4  ;;  %p1029_p5 = scmp.eq.s32.totalorder %s1289_s22, 2  ;;  %s714_s29 = int_to_ptr.vmem [resolvable:$true] %s713_s29 }
  0x6f   : > { %904 = vmatpush3.msra.mxu0 %v355_v1  ;;  %938 = vmatprep.subr.mxu1 %v1237_v2  ;;  %v349_v8 = vld [vmem:[%s1438_s7 + $0x48] sm:$0xff]  ;;  %v348_v9 = vld [vmem:[%s1438_s7 + $0x40] sm:$0xff]  ;;  %v347_v10 = vld [vmem:[%s1438_s7 + $0x38] sm:$0xff]  ;;  %s1164_s25 = scalar_lea.vmem %s714_s29, 128  ;;  %p1171_p9 = scmp.lt.s32.totalorder %s714_s29, %s714_s29 }
  0x70   : > { %905 = vmatprep.subr.mxu0 %v1237_v2  ;;  %970 = vmatprep.mubr.msk.f32.mxu1 %vm1238_vm0, %v1237_v2  ;;  %v346_v11 = vld [vmem:[%s1438_s7 + $0x30] sm:$0xff]  ;;  %v345_v12 = vld [vmem:[%s1438_s7 + $0x28] sm:$0xff]  ;;  %v344_v13 = vld [vmem:[%s1438_s7 + $0x20] sm:$0xff]  ;;  %p1165_p6 = scmp.ne.s32.totalorder %s714_s29, %s1164_s25  ;;  %p1172_p7 = scmp.lt.s32.totalorder %s1164_s25, %s1164_s25 }
  0x71   : > { %906 = vmatpush3.msra.mxu0 %v354_v3  ;;  %v343_v14 = vld [vmem:[%s1438_s7 + $0x18] sm:$0xff]  ;;  %v342_v15 = vld [vmem:[%s1438_s7 + $0x10] sm:$0xff]  ;;  %v341_v16 = vld [vmem:[%s1438_s7 + $0x8] sm:$0xff] }
  0x72   : > { %907 = vmatprep.subr.mxu0 %v1237_v2  ;;  %v340_v17 = vld [vmem:[%s1438_s7] sm:$0xff]  ;;  %v486_v19 = vld [vmem:[%s1445_s13 + $0x78] sm:$0xff]  ;;  %v485_v20 = vld [vmem:[%s1445_s13 + $0x70] sm:$0xff]  ;;  %p1166_p11 = pnand %p1165_p6, %p1029_p5  ;;  %p1173_p0 = por %p1172_p7, %p1171_p9 }
  0x73   : > { %908 = vmatpush3.msra.mxu0 %v353_v4  ;;  %v1500_v18 = vld [vmem:[#allocation8] sm:$0xff]  ;;  %939 = vmatpush3.msra.mxu1 %v486_v19  ;;  %v484_v21 = vld [vmem:[%s1445_s13 + $0x68] sm:$0xff]  ;;  %v482_v23 = vld [vmem:[%s1445_s13 + $0x58] sm:$0xff] }
  0x74   : > { %909 = vmatprep.subr.mxu0 %v1237_v2  ;;  %940 = vmatprep.subr.mxu1 %v1237_v2  ;;  %v483_v22 = vld [vmem:[%s1445_s13 + $0x60] sm:$0xff]  ;;  %v481_v24 = vld [vmem:[%s1445_s13 + $0x50] sm:$0xff]  ;;  %v480_v25 = vld [vmem:[%s1445_s13 + $0x48] sm:$0xff]  ;;  %p1167_p13 = pneg %p1166_p11 }
  0x75   : > { %910 = vmatpush3.msra.mxu0 %v352_v5  ;;  %941 = vmatpush3.msra.mxu1 %v485_v20  ;;  %v479_v26 = vld [vmem:[%s1445_s13 + $0x40] sm:$0xff]  ;;  %v478_v27 = vld [vmem:[%s1445_s13 + $0x38] sm:$0xff]  ;;  %v477_v28 = vld [vmem:[%s1445_s13 + $0x30] sm:$0xff] }
  0x76   : > { %911 = vmatprep.subr.mxu0 %v1237_v2  ;;  %942 = vmatprep.subr.mxu1 %v1237_v2  ;;  %v476_v29 = vld [vmem:[%s1445_s13 + $0x28] sm:$0xff]  ;;  %v475_v30 = vld [vmem:[%s1445_s13 + $0x20] sm:$0xff]  ;;  %v474_v31 = vld [vmem:[%s1445_s13 + $0x18] sm:$0xff]  ;;  %p1174_p1 = pnand %p1173_p0, %p1167_p13 }
  0x77   : > { %912 = vmatpush3.msra.mxu0 %v351_v6  ;;  %943 = vmatpush3.msra.mxu1 %v484_v21  ;;  %v473_v32 = vld [vmem:[%s1445_s13 + $0x10] sm:$0xff]  ;;  %v472_v33 = vld [vmem:[%s1445_s13 + $0x8] sm:$0xff]  ;;  %v471_v34 = vld [vmem:[%s1445_s13] sm:$0xff] }
  0x78   : > { %913 = vmatprep.subr.mxu0 %v1237_v2  ;;  %944 = vmatprep.subr.mxu1 %v1237_v2  ;;  %v628_v35 = vld [vmem:[%s1458_s30 + $0x78] sm:$0xff]  ;;  %v627_v36 = vld [vmem:[%s1458_s30 + $0x70] sm:$0xff]  ;;  %v626_v37 = vld [vmem:[%s1458_s30 + $0x68] sm:$0xff] }
  0x79   : > { %914 = vmatpush3.msra.mxu0 %v350_v7  ;;  %945 = vmatpush3.msra.mxu1 %v483_v22  ;;  %v625_v38 = vld [vmem:[%s1458_s30 + $0x60] sm:$0xff]  ;;  %v624_v39 = vld [vmem:[%s1458_s30 + $0x58] sm:$0xff]  ;;  %v623_v40 = vld [vmem:[%s1458_s30 + $0x50] sm:$0xff] }
  0x7a   : > { %915 = vmatprep.subr.mxu0 %v1237_v2  ;;  %946 = vmatprep.subr.mxu1 %v1237_v2  ;;  %v622_v41 = vld [vmem:[%s1458_s30 + $0x48] sm:$0xff]  ;;  %v621_v42 = vld [vmem:[%s1458_s30 + $0x40] sm:$0xff]  ;;  %v620_v43 = vld [vmem:[%s1458_s30 + $0x38] sm:$0xff] }
  0x7b   : > { %916 = vmatpush3.msra.mxu0 %v349_v8  ;;  %947 = vmatpush3.msra.mxu1 %v482_v23  ;;  %v619_v44 = vld [vmem:[%s1458_s30 + $0x30] sm:$0xff]  ;;  %v618_v45 = vld [vmem:[%s1458_s30 + $0x28] sm:$0xff]  ;;  %v617_v46 = vld [vmem:[%s1458_s30 + $0x20] sm:$0xff] }
  0x7c   : > { %917 = vmatprep.subr.mxu0 %v1237_v2  ;;  %948 = vmatprep.subr.mxu1 %v1237_v2  ;;  %v616_v47 = vld [vmem:[%s1458_s30 + $0x18] sm:$0xff]  ;;  %v615_v48 = vld [vmem:[%s1458_s30 + $0x10] sm:$0xff]  ;;  %v614_v49 = vld [vmem:[%s1458_s30 + $0x8] sm:$0xff] }
  0x7d   : > { %918 = vmatpush3.msra.mxu0 %v348_v9  ;;  %949 = vmatpush3.msra.mxu1 %v481_v24  ;;  %v613_v50 = vld [vmem:[%s1458_s30] sm:$0xff] }
  0x7e   : > { %919 = vmatprep.subr.mxu0 %v1237_v2  ;;  %950 = vmatprep.subr.mxu1 %v1237_v2  ;;  %v840_v24 = vld [vmem:[%s1456_s18 + $0x2] ss:$0 sm:$0xff] }
  0x7f   : > { %920 = vmatpush3.msra.mxu0 %v347_v10  ;;  %951 = vmatpush3.msra.mxu1 %v480_v25  ;;  %v836_v10 = vld [vmem:[%s1456_s18] ss:$0 sm:$0xff] }
  0x80   : > { %921 = vmatprep.subr.mxu0 %v1237_v2  ;;  %952 = vmatprep.subr.mxu1 %v1237_v2 }
  0x81   : > { %922 = vmatpush3.msra.mxu0 %v346_v11  ;;  %953 = vmatpush3.msra.mxu1 %v479_v26 }
  0x82   : > { %923 = vmatprep.subr.mxu0 %v1237_v2  ;;  %954 = vmatprep.subr.mxu1 %v1237_v2 }
  0x83   : > { %924 = vmatpush3.msra.mxu0 %v345_v12  ;;  %955 = vmatpush3.msra.mxu1 %v478_v27  ;;  %v837_v12 = vld [vmem:[%s1456_s18 + $0x1] ss:$0 sm:$0xff] }
  0x84   : > { %925 = vmatprep.subr.mxu0 %v1237_v2  ;;  %956 = vmatprep.subr.mxu1 %v1237_v2 }
  0x85   : > { %926 = vmatpush3.msra.mxu0 %v344_v13  ;;  %957 = vmatpush3.msra.mxu1 %v477_v28 }
  0x86   : > { %927 = vmatprep.subr.mxu0 %v1237_v2  ;;  %958 = vmatprep.subr.mxu1 %v1237_v2 }
  0x87   : > { %928 = vmatpush3.msra.mxu0 %v343_v14  ;;  %959 = vmatpush3.msra.mxu1 %v476_v29  ;;  %v838_v14 = vld [vmem:[%s1456_s18 + $0x6] ss:$0 sm:$0xff] }
  0x88   : > { %929 = vmatprep.subr.mxu0 %v1237_v2  ;;  %960 = vmatprep.subr.mxu1 %v1237_v2 }
  0x89   : > { %930 = vmatpush3.msra.mxu0 %v342_v15  ;;  %961 = vmatpush3.msra.mxu1 %v475_v30 }
  0x8a   : > { %931 = vmatprep.subr.mxu0 %v1237_v2  ;;  %962 = vmatprep.subr.mxu1 %v1237_v2 }
  0x8b   : > { %932 = vmatpush3.msra.mxu0 %v341_v16  ;;  %963 = vmatpush3.msra.mxu1 %v474_v31 }
  0x8c   : > { %933 = vmatprep.subr.mxu0 %v1237_v2  ;;  %964 = vmatprep.subr.mxu1 %v1237_v2 }
  0x8d   : > { %934 = vmatpush3.msra.mxu0 %v340_v17  ;;  %965 = vmatpush3.msra.mxu1 %v473_v32 }
  0x8e   : > { %936 = vmatmul.mubr.f32.vlgmr.msra.gmra.mxu0 %v1500_v18  ;;  %973 = vmatprep.subr.mxu0 %v1237_v2 }
  0x8f   : > { %1005 = vmatprep.mubr.msk.f32.mxu0 %vm1238_vm0, %v1237_v2  ;;  %966 = vmatprep.subr.mxu1 %v1237_v2 }
  0x90   : > { %967 = vmatpush3.msra.mxu1 %v472_v33  ;;  %974 = vmatpush3.msra.mxu0 %v628_v35 }
  0x91   : > { %968 = vmatprep.subr.mxu1 %v1237_v2  ;;  %975 = vmatprep.subr.mxu0 %v1237_v2 }
  0x92   : > { %969 = vmatpush3.msra.mxu1 %v471_v34  ;;  %976 = vmatpush3.msra.mxu0 %v627_v36 }
  0x93   : > { %977 = vmatprep.subr.mxu0 %v1237_v2 }
  0x94   : > { %978 = vmatpush3.msra.mxu0 %v626_v37 }
  0x95   : > { %979 = vmatprep.subr.mxu0 %v1237_v2 }
  0x96   : > { %980 = vmatpush3.msra.mxu0 %v625_v38 }
  0x97   : > { %981 = vmatprep.subr.mxu0 %v1237_v2 }
  0x98   : > { %982 = vmatpush3.msra.mxu0 %v624_v39 }
  0x99   : > { %983 = vmatprep.subr.mxu0 %v1237_v2 }
  0x9a   : > { %984 = vmatpush3.msra.mxu0 %v623_v40 }
  0x9b   : > { %985 = vmatprep.subr.mxu0 %v1237_v2 }
  0x9c   : > { %986 = vmatpush3.msra.mxu0 %v622_v41 }
  0x9d   : > { %987 = vmatprep.subr.mxu0 %v1237_v2 }
  0x9e   : > { %988 = vmatpush3.msra.mxu0 %v621_v42 }
  0x9f   : > { %989 = vmatprep.subr.mxu0 %v1237_v2 }
  0xa0   : > { %990 = vmatpush3.msra.mxu0 %v620_v43 }
  0xa1   : > { %991 = vmatprep.subr.mxu0 %v1237_v2 }
  0xa2   : > { %992 = vmatpush3.msra.mxu0 %v619_v44 }
  0xa3   : > { %993 = vmatprep.subr.mxu0 %v1237_v2 }
  0xa4   : > { %994 = vmatpush3.msra.mxu0 %v618_v45 }
  0xa5   : > { %995 = vmatprep.subr.mxu0 %v1237_v2 }
  0xa6   : > { %996 = vmatpush3.msra.mxu0 %v617_v46 }
  0xa7   : > { %997 = vmatprep.subr.mxu0 %v1237_v2 }
  0xa8   : > { %998 = vmatpush3.msra.mxu0 %v616_v47 }
  0xa9   : > { %999 = vmatprep.subr.mxu0 %v1237_v2 }
  0xaa   : > { %1000 = vmatpush3.msra.mxu0 %v615_v48 }
  0xab   : > { %1001 = vmatprep.subr.mxu0 %v1237_v2 }
  0xac   : > { %1002 = vmatpush3.msra.mxu0 %v614_v49 }
  0xad   : > { %1003 = vmatprep.subr.mxu0 %v1237_v2 }
  0xae   : > { %1004 = vmatpush3.msra.mxu0 %v613_v50 }
  0xaf   : > { %1006 = vmatmul.mubr.f32.vlgmr.msra.gmra.mxu0 %v1500_v18 }
 0x14e   : > { %v422_v51 = vpop.f32.mrf.mxu0 }
 0x14f   : > { %v426_v52 = vrot.slane %v422_v51, 4  ;;  %v434_v53 = vmul.f32 %v422_v51, %v422_v51 }
 0x150   : > { %v937_v54 = vpop.f32.mrf.mxu0 }
 0x151   : > { %v427_v55 = vadd.f32 %v426_v52, %v422_v51  ;;  %v435_v56 = vrot.slane %v434_v53, 4 }
 0x153   : > { %v428_v57 = vrot.slane %v427_v55, 2  ;;  %v436_v58 = vadd.f32 %v435_v56, %v434_v53  ;;  %v601_v53 = vlaneseq }
 0x155   : > { %v429_v59 = vadd.f32 %v428_v57, %v427_v55  ;;  %v437_v60 = vrot.slane %v436_v58, 2  ;;  %v602_v54 = vshrl.u32 %v601_v53, 7  ;;  %v339_v55 = vld [vmem:[%s1456_s18 + $0x7] sm:$0x1] }
 0x157   : > { %v430_v61 = vrot.slane %v429_v59, 1  ;;  %v438_v62 = vadd.f32 %v437_v60, %v436_v58  ;;  %v603_v57 = vsub.s32 0, %v602_v54  ;;  %v606_v58 = vsub.f32 1.0, %v339_v55  ;;  %v842_v60 = vld [vmem:[%s1456_s18 + $0x3] ss:$0 sm:$0xff] }
 0x159   : > { %v431_v63 = vadd.f32 %v430_v61, %v429_v59  ;;  %v439_v0 = vrot.slane %v438_v62, 1 }
 0x15b   : > { %v433_v1 = vmul.f32 0.125, %v431_v63  ;;  %v440_v2 = vadd.f32 %v439_v0, %v438_v62  ;;  %v843_v62 = vld [vmem:[%s1456_s18 + $0x4] ss:$0 sm:$0xff]  ;;  %v604_v0 = vrot.slane %v339_v55, %v603_v57 }
 0x15d   : > { %v441_v3 = vmul.f32 0.125, %v440_v2  ;;  %v442_v4 = vmul.f32 %v433_v1, %v433_v1  ;;  %v445_v8 = vsub.f32 %v422_v51, %v433_v1  ;;  %v610_v1 = vrot.slane %v606_v58, %v603_v57 }
 0x15f   : > { %v443_v5 = vsub.f32 %v441_v3, %v442_v4 }
 0x161   : > { %v444_v6 = vmax.f32 %v443_v5, 0.0 }
 0x163   : > { %v446_v7 = vadd.f32 1e-05, %v444_v6  ;;  %v844_v6 = vld [vmem:[%s1456_s18 + $0x5] ss:$0 sm:$0xff] }
 0x165   : > { %1068 = vrsqrt.f32 %v446_v7 }
 0x16f   : > { %v695_v22 = vpop.f32.mrf.mxu0 }
 0x171   : > { %v1007_v23 = vpop.f32.mrf.mxu0 }
 0x172   : > { %v1069_v9 = vpop.eup %1068 }
 0x173   : > { %v448_v11 = vmul.f32 %v1069_v9, %v445_v8 }
 0x175   : > { %v453_v13 = vmul.f32 %v836_v10, %v448_v11 }
 0x177   : > { %v458_v15 = vadd.f32 %v837_v12, %v453_v13 }
 0x179   : > { %v463_v16 = vmul.f32 %v838_v14, %v458_v15 }
 0x17b   : > { %v839_v17 = vmul.f32 -1.442695, %v463_v16 }
 0x17d   : > { %1070 = vpow2.f32 %v839_v17 }
 0x18a   : > { %v1071_v18 = vpop.eup %1070 }
 0x18b   : > { %v467_v19 = vadd.f32 1.0, %v1071_v18 }
 0x18d   : > { %1072 = vrcp.f32 %v467_v19 }
 0x19a   : > { %v1073_v20 = vpop.eup %1072 }
 0x19b   : > { %v470_v21 = vmul.f32 %v1073_v20, %v458_v15 }
 0x19d   : > { %971 = vmatmul.mubr.f32.vlgmr.msra.gmra.mxu1 %v470_v21 }
 0x25d   : > { %v557_v25 = vpop.f32.mrf.mxu1 }
 0x25e   : > { %v558_v26 = vadd.f32 %v840_v24, %v557_v25 }
 0x25f   : > { %v972_v27 = vpop.f32.mrf.mxu1 }
 0x260   : > { %v561_v28 = vmul.f32 %v838_v14, %v558_v26 }
 0x262   : > { %v841_v29 = vmul.f32 -1.442695, %v561_v28 }
 0x264   : > { %1074 = vpow2.f32 %v841_v29 }
 0x271   : > { %v1075_v30 = vpop.eup %1074 }
 0x272   : > { %v565_v31 = vadd.f32 1.0, %v1075_v30 }
 0x274   : > { %1076 = vrcp.f32 %v565_v31 }
 0x281   : > { %v1077_v32 = vpop.eup %1076 }
 0x282   : > { %v568_v33 = vmul.f32 %v1077_v32, %v558_v26 }
 0x284   : > { %v569_v34 = vrot.slane %v568_v33, 4  ;;  %v576_v35 = vmul.f32 %v568_v33, %v568_v33  ;;  %v611_v4 = vmul.f32 %v610_v1, %v568_v33 }
 0x286   : > { %v570_v36 = vadd.f32 %v569_v34, %v568_v33  ;;  %v577_v37 = vrot.slane %v576_v35, 4 }
 0x288   : > { %v571_v38 = vrot.slane %v570_v36, 2  ;;  %v578_v39 = vadd.f32 %v577_v37, %v576_v35 }
 0x28a   : > { %v579_v40 = vrot.slane %v578_v39, 2  ;;  %v572_v41 = vadd.f32 %v571_v38, %v570_v36 }
 0x28c   : > { %v580_v42 = vadd.f32 %v579_v40, %v578_v39  ;;  %v573_v43 = vrot.slane %v572_v41, 1 }
 0x28e   : > { %v581_v44 = vrot.slane %v580_v42, 1  ;;  %v574_v45 = vadd.f32 %v573_v43, %v572_v41 }
 0x290   : > { %v575_v46 = vmul.f32 0.125, %v574_v45  ;;  %v582_v47 = vadd.f32 %v581_v44, %v580_v42 }
 0x292   : > { %v583_v48 = vmul.f32 0.125, %v582_v47  ;;  %v584_v49 = vmul.f32 %v575_v46, %v575_v46  ;;  %v587_v56 = vsub.f32 %v568_v33, %v575_v46 }
 0x294   : > { %v585_v50 = vsub.f32 %v583_v48, %v584_v49 }
 0x296   : > { %v586_v51 = vmax.f32 %v585_v50, 0.0 }
 0x298   : > { %v588_v52 = vadd.f32 1e-05, %v586_v51 }
 0x29a   : > { %1078 = vrsqrt.f32 %v588_v52 }
 0x2a7   : > { %v1079_v59 = vpop.eup %1078 }
 0x2a8   : > { %v590_v61 = vmul.f32 %v1079_v59, %v587_v56 }
 0x2aa   : > { %v595_v63 = vmul.f32 %v842_v60, %v590_v61 }
 0x2ac   : > { %v600_v2 = vadd.f32 %v843_v62, %v595_v63 }
 0x2ae   : > { %v605_v3 = vmul.f32 %v604_v0, %v600_v2 }
 0x2b0   : > { %v612_v5 = vadd.f32 %v611_v4, %v605_v3 }
 0x2b2   : > { %v699_v7 = vadd.f32 %v695_v22, %v612_v5 }
 0x2b4   : > { %v704_v8 = vadd.f32 %v844_v6, %v699_v7 }
 0x2b6   : > { %705 = vst [vmem:[#allocation8] sm:$0xff] %v704_v8 }
 0x2b7   : > { %1177 = shalt.err (!%p1174_p1)
}
 0x2b8   : > { %1015 = dma.vmem_to_hbm [thread:$0]  (%p1029_p5), %s714_s29, 128, %s1608_s5, [#allocation4]  }
 0x2b9   : > { %1213 = dma.done.wait (%p1029_p5), [#allocation4], 128  }
 0x2ba   : > { %1215 = vsyncadd (%p1029_p5), [#allocation4], 4294967168 }
 0x2bb PF: > { %p19_p2 = scmp.ge.s32.totalorder %s1292_s23, 5   ;;  %s1624_s18 = smov %s1222_s19 }
 0x2bc   : > { %s1625_s19 = smov %s1226_s20  ;;  %s1626_s20 = smov %s1302_s26 }
 0x2bd   : > { %s1627_s21 = smov %s1292_s23  ;;  %21 = sbr.rel (!%p19_p2) target bundleno = 6 (0x6), region = 108 }
 0x2c2   :  { %726 = vsyncpa [#allocation3], 1 }
 0x2c3   :  { %728 = vsyncpa [#allocation3 + $0x1], 1 }
 0x2c4   :  { %729 = vsyncpa [#allocation6], 1 }
 0x2c5   :  { %731 = vsyncpa [#allocation6 + $0x1], 1 }
 0x2c6   :  { %732 = vsyncpa [#allocation4], 1 }
 0x2c7   :  { %734 = vsyncpa [#allocation4 + $0x1], 1 }

</bundles_post_ra>
